<compile_context>
chip_gen: v7x
topology: tpu7x:2x2x1
jax: 0.10.0
libtpu: 0.0.40
codegen_flags: <defaults>
</compile_context>

<pallas_src>
import jax
import jax.numpy as jnp
from jax import lax
from jax.experimental import pallas as pl
from jax.experimental.pallas import tpu as pltpu


def skipgram_kernel(idx_ref, w1_hbm, b1_ref, w2_ref, b2_ref, out_ref,
                    hidden_ref, m_ref, l_ref, gather_sem):
    # idx_ref    : SMEM [B] int32 (scalar prefetch, pre-clamped)
    # w1_hbm     : HBM  [V, D]   embedding table (== torch input_to_hidden.weight.T)
    # b1_ref     : VMEM [1, D]
    # w2_ref     : VMEM [tile_v, D]   torch hidden_to_output.weight tile (untransposed)
    # b2_ref     : VMEM [1, tile_v]
    # out_ref    : VMEM [tile_b, V]   resident output block for this batch tile
    # hidden_ref : VMEM [tile_b, D]   gathered embeddings (+ b1)
    # m_ref/l_ref: VMEM [tile_b, 1]   online logsumexp state
    i = pl.program_id(0)            # batch tile
    j = pl.program_id(1)            # vocab tile
    n_v = pl.num_programs(1)
    tile_b, D = hidden_ref.shape
    tile_v = w2_ref.shape[0]

    @pl.when(j == 0)
    def _prologue():
        # Embedding gather for this batch tile: tile_b tiny row DMAs from HBM.
        base = i * tile_b
        copies = []
        for b in range(tile_b):
            row = idx_ref[base + b]
            cp = pltpu.make_async_copy(
                w1_hbm.at[pl.ds(row, 1), :],
                hidden_ref.at[pl.ds(b, 1), :],
                gather_sem.at[b])
            cp.start()
            copies.append(cp)
        for cp in copies:
            cp.wait()
        hidden_ref[...] = hidden_ref[...] + b1_ref[...]
        m_ref[...] = jnp.full_like(m_ref, -jnp.inf)
        l_ref[...] = jnp.zeros_like(l_ref)

    # logits tile: hidden [tile_b, D] . w2_tile [tile_v, D]^T  (contract on D, f32 acc).
    logits = lax.dot_general(
        hidden_ref[...], w2_ref[...],
        dimension_numbers=(((1,), (1,)), ((), ())),
        preferred_element_type=jnp.float32) + b2_ref[...]

    # Stash unnormalized logits into the resident output block (lane-aligned column slice).
    col = pl.multiple_of(j * tile_v, 128)
    out_ref[:, pl.ds(col, tile_v)] = logits

    # Online logsumexp accumulation over vocab tiles.
    m_prev = m_ref[...]
    m_new = jnp.maximum(m_prev, jnp.max(logits, axis=-1, keepdims=True))
    l_ref[...] = (l_ref[...] * jnp.exp(m_prev - m_new)
                  + jnp.sum(jnp.exp(logits - m_new), axis=-1, keepdims=True))
    m_ref[...] = m_new

    @pl.when(j == n_v - 1)
    def _finalize():
        lse = m_ref[...] + jnp.log(l_ref[...])
        out_ref[...] = out_ref[...] - lse


def _pick_tile_v(V, D, budget_bytes=8 << 20):
    # Largest lane-aligned divisor of V whose double-buffered w2 tile fits the budget.
    for cand in (4096, 2048, 1024, 512, 256, 128):
        if V % cand == 0 and 2 * cand * D * 4 <= budget_bytes:
            return cand
    return V


def _pick_tile_b(B, V, budget_bytes=12 << 20):
    # Largest divisor of B that is a multiple of 8 and keeps the resident
    # (double-buffered) [tile_b, V] output block within the budget.
    if B % 8 != 0:
        return B
    for cand in (256, 128, 64, 32, 16, 8):
        if B % cand == 0 and 2 * cand * V * 4 <= budget_bytes:
            return cand
    return 8


def skipgram_forward(indices, w1t, b1, w2, b2, *, tile_v=None, tile_b=None):
    """SkipGram forward.

    indices: [B] int token ids
    w1t:     [V, D]  == torch input_to_hidden.weight.T (embedding-table layout, stored once)
    b1:      [D]
    w2:      [V, D]  == torch hidden_to_output.weight (untransposed)
    b2:      [V]
    returns: [B, V] float32 log-probs
    """
    B = indices.shape[0]
    V, D = w1t.shape
    assert w2.shape == (V, D)
    assert b1.shape == (D,) and b2.shape == (V,)

    if tile_v is None:
        tile_v = _pick_tile_v(V, D)
    assert V % tile_v == 0 and (tile_v % 128 == 0 or tile_v == V)
    n_v = V // tile_v

    if tile_b is None:
        tile_b = _pick_tile_b(B, V)
    assert B % tile_b == 0 and (tile_b % 8 == 0 or tile_b == B)
    n_b = B // tile_b

    idx = jnp.clip(indices.astype(jnp.int32), 0, V - 1)   # guard the HBM gather
    b1r = b1.reshape(1, D).astype(jnp.float32)
    b2r = b2.reshape(1, V).astype(jnp.float32)

    grid_spec = pltpu.PrefetchScalarGridSpec(
        num_scalar_prefetch=1,
        grid=(n_b, n_v),
        in_specs=[
            pl.BlockSpec(memory_space=pl.ANY),                     # w1t stays in HBM
            pl.BlockSpec((1, D), lambda i, j, idx: (0, 0)),        # b1
            pl.BlockSpec((tile_v, D), lambda i, j, idx: (j, 0)),   # w2 vocab tile
            pl.BlockSpec((1, tile_v), lambda i, j, idx: (0, j)),   # b2 vocab tile
        ],
        # Resident output block per batch tile; written back when the batch tile changes.
        out_specs=pl.BlockSpec((tile_b, V), lambda i, j, idx: (i, 0)),
        scratch_shapes=[
            pltpu.VMEM((tile_b, D), jnp.float32),   # gathered hidden (+ b1)
            pltpu.VMEM((tile_b, 1), jnp.float32),   # running max
            pltpu.VMEM((tile_b, 1), jnp.float32),   # running sum
            pltpu.SemaphoreType.DMA((tile_b,)),     # gather semaphores
        ],
    )

    cost = pl.CostEstimate(
        flops=2 * B * V * D + 6 * B * V,
        transcendentals=B * V + 2 * B,
        bytes_accessed=4 * (n_b * V * D + B * D + B * V + n_b * V + D) + 4 * B,
    )

    return pl.pallas_call(
        skipgram_kernel,
        out_shape=jax.ShapeDtypeStruct((B, V), jnp.float32),
        grid_spec=grid_spec,
        compiler_params=pltpu.CompilerParams(
            # Vocab axis carries the online-logsumexp state + resident output block.
            dimension_semantics=("parallel", "arbitrary")),
        cost_estimate=cost,
    )(idx, w1t, b1r, w2, b2r)


def reference_forward(indices, w1t, b1, w2, b2):
    V = w1t.shape[0]
    one_hot = jax.nn.one_hot(indices, V, dtype=jnp.float32)
    hidden = one_hot @ w1t + b1          # == one_hot @ W1.T + b1
    logits = hidden @ w2.T + b2          # == hidden @ W2.T + b2
    return jax.nn.log_softmax(logits, axis=1)


if __name__ == "__main__":
    vocab_size = 512
    vector_dim = 128
    batch = 8

    key = jax.random.PRNGKey(0)
    k_idx, k_w1, k_b1, k_w2, k_b2 = jax.random.split(key, 5)

    # torch-Linear-like deterministic init (W1: [D, V], W2: [V, D]).
    bound1 = 1.0 / (vocab_size ** 0.5)
    bound2 = 1.0 / (vector_dim ** 0.5)
    w1 = jax.random.uniform(k_w1, (vector_dim, vocab_size), jnp.float32, -bound1, bound1)
    b1 = jax.random.uniform(k_b1, (vector_dim,), jnp.float32, -bound1, bound1)
    w2 = jax.random.uniform(k_w2, (vocab_size, vector_dim), jnp.float32, -bound2, bound2)
    b2 = jax.random.uniform(k_b2, (vocab_size,), jnp.float32, -bound2, bound2)

    # One-time layout change of the embedding table (outside the per-call path).
    w1t = jnp.transpose(w1)   # [V, D]

    indices = jax.random.randint(k_idx, (batch,), 0, vocab_size, dtype=jnp.int32)

    out = skipgram_forward(indices, w1t, b1, w2, b2, tile_v=128)
    out = jax.block_until_ready(out)

    ref = reference_forward(indices, w1t, b1, w2, b2)
    assert out.shape == (batch, vocab_size)
    assert jnp.allclose(out, ref, atol=2e-5, rtol=1e-5)

    print("KERNEL_OK")
</pallas_src>

<mosaic_0001>
module attributes {stable_mosaic.version = 11 : i64} {
  func.func @skipgram_kernel(%arg0: i32, %arg1: i32, %arg2: memref<8xi32, #tpu.memory_space<smem>>, %arg3: memref<512x128xf32, #tpu.memory_space<any>>, %arg4: memref<1x128xf32, #tpu.memory_space<vmem>>, %arg5: memref<128x128xf32, #tpu.memory_space<vmem>>, %arg6: memref<1x128xf32, #tpu.memory_space<vmem>>, %arg7: memref<8x512xf32, #tpu.memory_space<vmem>>, %arg8: memref<8x128xf32, #tpu.memory_space<vmem>>, %arg9: memref<8x1xf32, #tpu.memory_space<vmem>>, %arg10: memref<8x1xf32, #tpu.memory_space<vmem>>, %arg11: memref<8x!tpu.dma_semaphore, #tpu.memory_space<semaphore_mem>>) attributes {dimension_semantics = [#tpu.dimension_semantics<parallel>, #tpu.dimension_semantics<arbitrary>], iteration_bounds = array<i64: 1, 4>, scalar_prefetch = 1 : i64, scratch_operands = 4 : i64, tpu.core_type = #tpu.core_type<tc>, window_params = [{}, {pipeline_mode = #tpu.pipeline_mode<synchronous>, transform_indices = @transform_1, window_bounds = array<i64: 1, 128>}, {transform_indices = @transform_2, window_bounds = array<i64: 128, 128>}, {transform_indices = @transform_3, window_bounds = array<i64: 1, 128>}, {transform_indices = @transform_4, window_bounds = array<i64: 8, 512>}]} {
    %c0_i32 = arith.constant 0 : i32
    %0 = arith.cmpi eq, %arg1, %c0_i32 : i32
    %1 = arith.extui %0 : i1 to i32
    %c0_i32_0 = arith.constant 0 : i32
    %2 = arith.cmpi ne, %1, %c0_i32_0 : i32
    scf.if %2 {
      %c8_i32 = arith.constant 8 : i32
      %32 = arith.muli %arg0, %c8_i32 : i32
      %c0_i32_18 = arith.constant 0 : i32
      %33 = arith.addi %32, %c0_i32_18 : i32
      %34 = arith.index_cast %33 : i32 to index
      %35 = memref.load %arg2[%34] : memref<8xi32, #tpu.memory_space<smem>>
      %c0_i32_19 = arith.constant 0 : i32
      %c0_i32_20 = arith.constant 0 : i32
      %36 = tpu.memref_slice %arg3[%35, %c0_i32_20] : memref<512x128xf32, #tpu.memory_space<any>> -> memref<1x128xf32, #tpu.memory_space<any>>
      %c0_i32_21 = arith.constant 0 : i32
      %c0_i32_22 = arith.constant 0 : i32
      %37 = tpu.memref_slice %arg8[%c0_i32_21, %c0_i32_22] : memref<8x128xf32, #tpu.memory_space<vmem>> -> memref<1x128xf32, #tpu.memory_space<vmem>>
      %38 = tpu.memref_slice %arg11[%c0_i32_19] : memref<8x!tpu.dma_semaphore, #tpu.memory_space<semaphore_mem>> -> memref<1x!tpu.dma_semaphore, #tpu.memory_space<semaphore_mem>>
      %39 = tpu.memref_squeeze %38 : memref<1x!tpu.dma_semaphore, #tpu.memory_space<semaphore_mem>> -> memref<!tpu.dma_semaphore, #tpu.memory_space<semaphore_mem>>
      tpu.enqueue_dma source(%36 : memref<1x128xf32, #tpu.memory_space<any>>) target(%37 : memref<1x128xf32, #tpu.memory_space<vmem>>) target_semaphore(%39 : memref<!tpu.dma_semaphore, #tpu.memory_space<semaphore_mem>>)
      %c1_i32 = arith.constant 1 : i32
      %40 = arith.addi %32, %c1_i32 : i32
      %41 = arith.index_cast %40 : i32 to index
      %42 = memref.load %arg2[%41] : memref<8xi32, #tpu.memory_space<smem>>
      %c1_i32_23 = arith.constant 1 : i32
      %c0_i32_24 = arith.constant 0 : i32
      %43 = tpu.memref_slice %arg3[%42, %c0_i32_24] : memref<512x128xf32, #tpu.memory_space<any>> -> memref<1x128xf32, #tpu.memory_space<any>>
      %c1_i32_25 = arith.constant 1 : i32
      %c0_i32_26 = arith.constant 0 : i32
      %44 = tpu.memref_slice %arg8[%c1_i32_25, %c0_i32_26] : memref<8x128xf32, #tpu.memory_space<vmem>> -> memref<1x128xf32, #tpu.memory_space<vmem>>
      %45 = tpu.memref_slice %arg11[%c1_i32_23] : memref<8x!tpu.dma_semaphore, #tpu.memory_space<semaphore_mem>> -> memref<1x!tpu.dma_semaphore, #tpu.memory_space<semaphore_mem>>
      %46 = tpu.memref_squeeze %45 : memref<1x!tpu.dma_semaphore, #tpu.memory_space<semaphore_mem>> -> memref<!tpu.dma_semaphore, #tpu.memory_space<semaphore_mem>>
      tpu.enqueue_dma source(%43 : memref<1x128xf32, #tpu.memory_space<any>>) target(%44 : memref<1x128xf32, #tpu.memory_space<vmem>>) target_semaphore(%46 : memref<!tpu.dma_semaphore, #tpu.memory_space<semaphore_mem>>)
      %c2_i32 = arith.constant 2 : i32
      %47 = arith.addi %32, %c2_i32 : i32
      %48 = arith.index_cast %47 : i32 to index
      %49 = memref.load %arg2[%48] : memref<8xi32, #tpu.memory_space<smem>>
      %c2_i32_27 = arith.constant 2 : i32
      %c0_i32_28 = arith.constant 0 : i32
      %50 = tpu.memref_slice %arg3[%49, %c0_i32_28] : memref<512x128xf32, #tpu.memory_space<any>> -> memref<1x128xf32, #tpu.memory_space<any>>
      %c2_i32_29 = arith.constant 2 : i32
      %c0_i32_30 = arith.constant 0 : i32
      %51 = tpu.memref_slice %arg8[%c2_i32_29, %c0_i32_30] : memref<8x128xf32, #tpu.memory_space<vmem>> -> memref<1x128xf32, #tpu.memory_space<vmem>>
      %52 = tpu.memref_slice %arg11[%c2_i32_27] : memref<8x!tpu.dma_semaphore, #tpu.memory_space<semaphore_mem>> -> memref<1x!tpu.dma_semaphore, #tpu.memory_space<semaphore_mem>>
      %53 = tpu.memref_squeeze %52 : memref<1x!tpu.dma_semaphore, #tpu.memory_space<semaphore_mem>> -> memref<!tpu.dma_semaphore, #tpu.memory_space<semaphore_mem>>
      tpu.enqueue_dma source(%50 : memref<1x128xf32, #tpu.memory_space<any>>) target(%51 : memref<1x128xf32, #tpu.memory_space<vmem>>) target_semaphore(%53 : memref<!tpu.dma_semaphore, #tpu.memory_space<semaphore_mem>>)
      %c3_i32_31 = arith.constant 3 : i32
      %54 = arith.addi %32, %c3_i32_31 : i32
      %55 = arith.index_cast %54 : i32 to index
      %56 = memref.load %arg2[%55] : memref<8xi32, #tpu.memory_space<smem>>
      %c3_i32_32 = arith.constant 3 : i32
      %c0_i32_33 = arith.constant 0 : i32
      %57 = tpu.memref_slice %arg3[%56, %c0_i32_33] : memref<512x128xf32, #tpu.memory_space<any>> -> memref<1x128xf32, #tpu.memory_space<any>>
      %c3_i32_34 = arith.constant 3 : i32
      %c0_i32_35 = arith.constant 0 : i32
      %58 = tpu.memref_slice %arg8[%c3_i32_34, %c0_i32_35] : memref<8x128xf32, #tpu.memory_space<vmem>> -> memref<1x128xf32, #tpu.memory_space<vmem>>
      %59 = tpu.memref_slice %arg11[%c3_i32_32] : memref<8x!tpu.dma_semaphore, #tpu.memory_space<semaphore_mem>> -> memref<1x!tpu.dma_semaphore, #tpu.memory_space<semaphore_mem>>
      %60 = tpu.memref_squeeze %59 : memref<1x!tpu.dma_semaphore, #tpu.memory_space<semaphore_mem>> -> memref<!tpu.dma_semaphore, #tpu.memory_space<semaphore_mem>>
      tpu.enqueue_dma source(%57 : memref<1x128xf32, #tpu.memory_space<any>>) target(%58 : memref<1x128xf32, #tpu.memory_space<vmem>>) target_semaphore(%60 : memref<!tpu.dma_semaphore, #tpu.memory_space<semaphore_mem>>)
      %c4_i32 = arith.constant 4 : i32
      %61 = arith.addi %32, %c4_i32 : i32
      %62 = arith.index_cast %61 : i32 to index
      %63 = memref.load %arg2[%62] : memref<8xi32, #tpu.memory_space<smem>>
      %c4_i32_36 = arith.constant 4 : i32
      %c0_i32_37 = arith.constant 0 : i32
      %64 = tpu.memref_slice %arg3[%63, %c0_i32_37] : memref<512x128xf32, #tpu.memory_space<any>> -> memref<1x128xf32, #tpu.memory_space<any>>
      %c4_i32_38 = arith.constant 4 : i32
      %c0_i32_39 = arith.constant 0 : i32
      %65 = tpu.memref_slice %arg8[%c4_i32_38, %c0_i32_39] : memref<8x128xf32, #tpu.memory_space<vmem>> -> memref<1x128xf32, #tpu.memory_space<vmem>>
      %66 = tpu.memref_slice %arg11[%c4_i32_36] : memref<8x!tpu.dma_semaphore, #tpu.memory_space<semaphore_mem>> -> memref<1x!tpu.dma_semaphore, #tpu.memory_space<semaphore_mem>>
      %67 = tpu.memref_squeeze %66 : memref<1x!tpu.dma_semaphore, #tpu.memory_space<semaphore_mem>> -> memref<!tpu.dma_semaphore, #tpu.memory_space<semaphore_mem>>
      tpu.enqueue_dma source(%64 : memref<1x128xf32, #tpu.memory_space<any>>) target(%65 : memref<1x128xf32, #tpu.memory_space<vmem>>) target_semaphore(%67 : memref<!tpu.dma_semaphore, #tpu.memory_space<semaphore_mem>>)
      %c5_i32 = arith.constant 5 : i32
      %68 = arith.addi %32, %c5_i32 : i32
      %69 = arith.index_cast %68 : i32 to index
      %70 = memref.load %arg2[%69] : memref<8xi32, #tpu.memory_space<smem>>
      %c5_i32_40 = arith.constant 5 : i32
      %c0_i32_41 = arith.constant 0 : i32
      %71 = tpu.memref_slice %arg3[%70, %c0_i32_41] : memref<512x128xf32, #tpu.memory_space<any>> -> memref<1x128xf32, #tpu.memory_space<any>>
      %c5_i32_42 = arith.constant 5 : i32
      %c0_i32_43 = arith.constant 0 : i32
      %72 = tpu.memref_slice %arg8[%c5_i32_42, %c0_i32_43] : memref<8x128xf32, #tpu.memory_space<vmem>> -> memref<1x128xf32, #tpu.memory_space<vmem>>
      %73 = tpu.memref_slice %arg11[%c5_i32_40] : memref<8x!tpu.dma_semaphore, #tpu.memory_space<semaphore_mem>> -> memref<1x!tpu.dma_semaphore, #tpu.memory_space<semaphore_mem>>
      %74 = tpu.memref_squeeze %73 : memref<1x!tpu.dma_semaphore, #tpu.memory_space<semaphore_mem>> -> memref<!tpu.dma_semaphore, #tpu.memory_space<semaphore_mem>>
      tpu.enqueue_dma source(%71 : memref<1x128xf32, #tpu.memory_space<any>>) target(%72 : memref<1x128xf32, #tpu.memory_space<vmem>>) target_semaphore(%74 : memref<!tpu.dma_semaphore, #tpu.memory_space<semaphore_mem>>)
      %c6_i32 = arith.constant 6 : i32
      %75 = arith.addi %32, %c6_i32 : i32
      %76 = arith.index_cast %75 : i32 to index
      %77 = memref.load %arg2[%76] : memref<8xi32, #tpu.memory_space<smem>>
      %c6_i32_44 = arith.constant 6 : i32
      %c0_i32_45 = arith.constant 0 : i32
      %78 = tpu.memref_slice %arg3[%77, %c0_i32_45] : memref<512x128xf32, #tpu.memory_space<any>> -> memref<1x128xf32, #tpu.memory_space<any>>
      %c6_i32_46 = arith.constant 6 : i32
      %c0_i32_47 = arith.constant 0 : i32
      %79 = tpu.memref_slice %arg8[%c6_i32_46, %c0_i32_47] : memref<8x128xf32, #tpu.memory_space<vmem>> -> memref<1x128xf32, #tpu.memory_space<vmem>>
      %80 = tpu.memref_slice %arg11[%c6_i32_44] : memref<8x!tpu.dma_semaphore, #tpu.memory_space<semaphore_mem>> -> memref<1x!tpu.dma_semaphore, #tpu.memory_space<semaphore_mem>>
      %81 = tpu.memref_squeeze %80 : memref<1x!tpu.dma_semaphore, #tpu.memory_space<semaphore_mem>> -> memref<!tpu.dma_semaphore, #tpu.memory_space<semaphore_mem>>
      tpu.enqueue_dma source(%78 : memref<1x128xf32, #tpu.memory_space<any>>) target(%79 : memref<1x128xf32, #tpu.memory_space<vmem>>) target_semaphore(%81 : memref<!tpu.dma_semaphore, #tpu.memory_space<semaphore_mem>>)
      %c7_i32 = arith.constant 7 : i32
      %82 = arith.addi %32, %c7_i32 : i32
      %83 = arith.index_cast %82 : i32 to index
      %84 = memref.load %arg2[%83] : memref<8xi32, #tpu.memory_space<smem>>
      %c7_i32_48 = arith.constant 7 : i32
      %c0_i32_49 = arith.constant 0 : i32
      %85 = tpu.memref_slice %arg3[%84, %c0_i32_49] : memref<512x128xf32, #tpu.memory_space<any>> -> memref<1x128xf32, #tpu.memory_space<any>>
      %c7_i32_50 = arith.constant 7 : i32
      %c0_i32_51 = arith.constant 0 : i32
      %86 = tpu.memref_slice %arg8[%c7_i32_50, %c0_i32_51] : memref<8x128xf32, #tpu.memory_space<vmem>> -> memref<1x128xf32, #tpu.memory_space<vmem>>
      %87 = tpu.memref_slice %arg11[%c7_i32_48] : memref<8x!tpu.dma_semaphore, #tpu.memory_space<semaphore_mem>> -> memref<1x!tpu.dma_semaphore, #tpu.memory_space<semaphore_mem>>
      %88 = tpu.memref_squeeze %87 : memref<1x!tpu.dma_semaphore, #tpu.memory_space<semaphore_mem>> -> memref<!tpu.dma_semaphore, #tpu.memory_space<semaphore_mem>>
      tpu.enqueue_dma source(%85 : memref<1x128xf32, #tpu.memory_space<any>>) target(%86 : memref<1x128xf32, #tpu.memory_space<vmem>>) target_semaphore(%88 : memref<!tpu.dma_semaphore, #tpu.memory_space<semaphore_mem>>)
      %c0_i32_52 = arith.constant 0 : i32
      %c0_i32_53 = arith.constant 0 : i32
      %89 = tpu.memref_slice %arg3[%35, %c0_i32_53] : memref<512x128xf32, #tpu.memory_space<any>> -> memref<1x128xf32, #tpu.memory_space<any>>
      %c0_i32_54 = arith.constant 0 : i32
      %c0_i32_55 = arith.constant 0 : i32
      %90 = tpu.memref_slice %arg8[%c0_i32_54, %c0_i32_55] : memref<8x128xf32, #tpu.memory_space<vmem>> -> memref<1x128xf32, #tpu.memory_space<vmem>>
      %91 = tpu.memref_slice %arg11[%c0_i32_52] : memref<8x!tpu.dma_semaphore, #tpu.memory_space<semaphore_mem>> -> memref<1x!tpu.dma_semaphore, #tpu.memory_space<semaphore_mem>>
      %92 = tpu.memref_squeeze %91 : memref<1x!tpu.dma_semaphore, #tpu.memory_space<semaphore_mem>> -> memref<!tpu.dma_semaphore, #tpu.memory_space<semaphore_mem>>
      tpu.wait_dma2 semaphore(%92 : memref<!tpu.dma_semaphore, #tpu.memory_space<semaphore_mem>>) src(%89 : memref<1x128xf32, #tpu.memory_space<any>>) dst(%90 : memref<1x128xf32, #tpu.memory_space<vmem>>)
      %c1_i32_56 = arith.constant 1 : i32
      %c0_i32_57 = arith.constant 0 : i32
      %93 = tpu.memref_slice %arg3[%42, %c0_i32_57] : memref<512x128xf32, #tpu.memory_space<any>> -> memref<1x128xf32, #tpu.memory_space<any>>
      %c1_i32_58 = arith.constant 1 : i32
      %c0_i32_59 = arith.constant 0 : i32
      %94 = tpu.memref_slice %arg8[%c1_i32_58, %c0_i32_59] : memref<8x128xf32, #tpu.memory_space<vmem>> -> memref<1x128xf32, #tpu.memory_space<vmem>>
      %95 = tpu.memref_slice %arg11[%c1_i32_56] : memref<8x!tpu.dma_semaphore, #tpu.memory_space<semaphore_mem>> -> memref<1x!tpu.dma_semaphore, #tpu.memory_space<semaphore_mem>>
      %96 = tpu.memref_squeeze %95 : memref<1x!tpu.dma_semaphore, #tpu.memory_space<semaphore_mem>> -> memref<!tpu.dma_semaphore, #tpu.memory_space<semaphore_mem>>
      tpu.wait_dma2 semaphore(%96 : memref<!tpu.dma_semaphore, #tpu.memory_space<semaphore_mem>>) src(%93 : memref<1x128xf32, #tpu.memory_space<any>>) dst(%94 : memref<1x128xf32, #tpu.memory_space<vmem>>)
      %c2_i32_60 = arith.constant 2 : i32
      %c0_i32_61 = arith.constant 0 : i32
      %97 = tpu.memref_slice %arg3[%49, %c0_i32_61] : memref<512x128xf32, #tpu.memory_space<any>> -> memref<1x128xf32, #tpu.memory_space<any>>
      %c2_i32_62 = arith.constant 2 : i32
      %c0_i32_63 = arith.constant 0 : i32
      %98 = tpu.memref_slice %arg8[%c2_i32_62, %c0_i32_63] : memref<8x128xf32, #tpu.memory_space<vmem>> -> memref<1x128xf32, #tpu.memory_space<vmem>>
      %99 = tpu.memref_slice %arg11[%c2_i32_60] : memref<8x!tpu.dma_semaphore, #tpu.memory_space<semaphore_mem>> -> memref<1x!tpu.dma_semaphore, #tpu.memory_space<semaphore_mem>>
      %100 = tpu.memref_squeeze %99 : memref<1x!tpu.dma_semaphore, #tpu.memory_space<semaphore_mem>> -> memref<!tpu.dma_semaphore, #tpu.memory_space<semaphore_mem>>
      tpu.wait_dma2 semaphore(%100 : memref<!tpu.dma_semaphore, #tpu.memory_space<semaphore_mem>>) src(%97 : memref<1x128xf32, #tpu.memory_space<any>>) dst(%98 : memref<1x128xf32, #tpu.memory_space<vmem>>)
      %c3_i32_64 = arith.constant 3 : i32
      %c0_i32_65 = arith.constant 0 : i32
      %101 = tpu.memref_slice %arg3[%56, %c0_i32_65] : memref<512x128xf32, #tpu.memory_space<any>> -> memref<1x128xf32, #tpu.memory_space<any>>
      %c3_i32_66 = arith.constant 3 : i32
      %c0_i32_67 = arith.constant 0 : i32
      %102 = tpu.memref_slice %arg8[%c3_i32_66, %c0_i32_67] : memref<8x128xf32, #tpu.memory_space<vmem>> -> memref<1x128xf32, #tpu.memory_space<vmem>>
      %103 = tpu.memref_slice %arg11[%c3_i32_64] : memref<8x!tpu.dma_semaphore, #tpu.memory_space<semaphore_mem>> -> memref<1x!tpu.dma_semaphore, #tpu.memory_space<semaphore_mem>>
      %104 = tpu.memref_squeeze %103 : memref<1x!tpu.dma_semaphore, #tpu.memory_space<semaphore_mem>> -> memref<!tpu.dma_semaphore, #tpu.memory_space<semaphore_mem>>
      tpu.wait_dma2 semaphore(%104 : memref<!tpu.dma_semaphore, #tpu.memory_space<semaphore_mem>>) src(%101 : memref<1x128xf32, #tpu.memory_space<any>>) dst(%102 : memref<1x128xf32, #tpu.memory_space<vmem>>)
      %c4_i32_68 = arith.constant 4 : i32
      %c0_i32_69 = arith.constant 0 : i32
      %105 = tpu.memref_slice %arg3[%63, %c0_i32_69] : memref<512x128xf32, #tpu.memory_space<any>> -> memref<1x128xf32, #tpu.memory_space<any>>
      %c4_i32_70 = arith.constant 4 : i32
      %c0_i32_71 = arith.constant 0 : i32
      %106 = tpu.memref_slice %arg8[%c4_i32_70, %c0_i32_71] : memref<8x128xf32, #tpu.memory_space<vmem>> -> memref<1x128xf32, #tpu.memory_space<vmem>>
      %107 = tpu.memref_slice %arg11[%c4_i32_68] : memref<8x!tpu.dma_semaphore, #tpu.memory_space<semaphore_mem>> -> memref<1x!tpu.dma_semaphore, #tpu.memory_space<semaphore_mem>>
      %108 = tpu.memref_squeeze %107 : memref<1x!tpu.dma_semaphore, #tpu.memory_space<semaphore_mem>> -> memref<!tpu.dma_semaphore, #tpu.memory_space<semaphore_mem>>
      tpu.wait_dma2 semaphore(%108 : memref<!tpu.dma_semaphore, #tpu.memory_space<semaphore_mem>>) src(%105 : memref<1x128xf32, #tpu.memory_space<any>>) dst(%106 : memref<1x128xf32, #tpu.memory_space<vmem>>)
      %c5_i32_72 = arith.constant 5 : i32
      %c0_i32_73 = arith.constant 0 : i32
      %109 = tpu.memref_slice %arg3[%70, %c0_i32_73] : memref<512x128xf32, #tpu.memory_space<any>> -> memref<1x128xf32, #tpu.memory_space<any>>
      %c5_i32_74 = arith.constant 5 : i32
      %c0_i32_75 = arith.constant 0 : i32
      %110 = tpu.memref_slice %arg8[%c5_i32_74, %c0_i32_75] : memref<8x128xf32, #tpu.memory_space<vmem>> -> memref<1x128xf32, #tpu.memory_space<vmem>>
      %111 = tpu.memref_slice %arg11[%c5_i32_72] : memref<8x!tpu.dma_semaphore, #tpu.memory_space<semaphore_mem>> -> memref<1x!tpu.dma_semaphore, #tpu.memory_space<semaphore_mem>>
      %112 = tpu.memref_squeeze %111 : memref<1x!tpu.dma_semaphore, #tpu.memory_space<semaphore_mem>> -> memref<!tpu.dma_semaphore, #tpu.memory_space<semaphore_mem>>
      tpu.wait_dma2 semaphore(%112 : memref<!tpu.dma_semaphore, #tpu.memory_space<semaphore_mem>>) src(%109 : memref<1x128xf32, #tpu.memory_space<any>>) dst(%110 : memref<1x128xf32, #tpu.memory_space<vmem>>)
      %c6_i32_76 = arith.constant 6 : i32
      %c0_i32_77 = arith.constant 0 : i32
      %113 = tpu.memref_slice %arg3[%77, %c0_i32_77] : memref<512x128xf32, #tpu.memory_space<any>> -> memref<1x128xf32, #tpu.memory_space<any>>
      %c6_i32_78 = arith.constant 6 : i32
      %c0_i32_79 = arith.constant 0 : i32
      %114 = tpu.memref_slice %arg8[%c6_i32_78, %c0_i32_79] : memref<8x128xf32, #tpu.memory_space<vmem>> -> memref<1x128xf32, #tpu.memory_space<vmem>>
      %115 = tpu.memref_slice %arg11[%c6_i32_76] : memref<8x!tpu.dma_semaphore, #tpu.memory_space<semaphore_mem>> -> memref<1x!tpu.dma_semaphore, #tpu.memory_space<semaphore_mem>>
      %116 = tpu.memref_squeeze %115 : memref<1x!tpu.dma_semaphore, #tpu.memory_space<semaphore_mem>> -> memref<!tpu.dma_semaphore, #tpu.memory_space<semaphore_mem>>
      tpu.wait_dma2 semaphore(%116 : memref<!tpu.dma_semaphore, #tpu.memory_space<semaphore_mem>>) src(%113 : memref<1x128xf32, #tpu.memory_space<any>>) dst(%114 : memref<1x128xf32, #tpu.memory_space<vmem>>)
      %c7_i32_80 = arith.constant 7 : i32
      %c0_i32_81 = arith.constant 0 : i32
      %117 = tpu.memref_slice %arg3[%84, %c0_i32_81] : memref<512x128xf32, #tpu.memory_space<any>> -> memref<1x128xf32, #tpu.memory_space<any>>
      %c7_i32_82 = arith.constant 7 : i32
      %c0_i32_83 = arith.constant 0 : i32
      %118 = tpu.memref_slice %arg8[%c7_i32_82, %c0_i32_83] : memref<8x128xf32, #tpu.memory_space<vmem>> -> memref<1x128xf32, #tpu.memory_space<vmem>>
      %119 = tpu.memref_slice %arg11[%c7_i32_80] : memref<8x!tpu.dma_semaphore, #tpu.memory_space<semaphore_mem>> -> memref<1x!tpu.dma_semaphore, #tpu.memory_space<semaphore_mem>>
      %120 = tpu.memref_squeeze %119 : memref<1x!tpu.dma_semaphore, #tpu.memory_space<semaphore_mem>> -> memref<!tpu.dma_semaphore, #tpu.memory_space<semaphore_mem>>
      tpu.wait_dma2 semaphore(%120 : memref<!tpu.dma_semaphore, #tpu.memory_space<semaphore_mem>>) src(%117 : memref<1x128xf32, #tpu.memory_space<any>>) dst(%118 : memref<1x128xf32, #tpu.memory_space<vmem>>)
      %c0_84 = arith.constant 0 : index
      %c0_85 = arith.constant 0 : index
      %121 = vector.load %arg8[%c0_84, %c0_85] : memref<8x128xf32, #tpu.memory_space<vmem>>, vector<8x128xf32>
      %c0_86 = arith.constant 0 : index
      %c0_87 = arith.constant 0 : index
      %122 = vector.load %arg4[%c0_86, %c0_87] : memref<1x128xf32, #tpu.memory_space<vmem>>, vector<1x128xf32>
      %123 = vector.broadcast %122 : vector<1x128xf32> to vector<8x128xf32>
      %124 = arith.addf %121, %123 : vector<8x128xf32>
      %c0_88 = arith.constant 0 : index
      %c0_89 = arith.constant 0 : index
      %125 = vector.load %arg8[%c0_88, %c0_89] : memref<8x128xf32, #tpu.memory_space<vmem>>, vector<8x128xf32>
      tpu.vector_store %arg8[%c0_88, %c0_89], %124 {strides = array<i32>} : memref<8x128xf32, #tpu.memory_space<vmem>>, vector<8x128xf32>,
      %cst_90 = arith.constant 0xFF800000 : f32
      %126 = vector.broadcast %cst_90 : f32 to vector<8x1xf32>
      %c0_91 = arith.constant 0 : index
      %c0_92 = arith.constant 0 : index
      %127 = vector.load %arg9[%c0_91, %c0_92] : memref<8x1xf32, #tpu.memory_space<vmem>>, vector<8x1xf32>
      tpu.vector_store %arg9[%c0_91, %c0_92], %126 {strides = array<i32>} : memref<8x1xf32, #tpu.memory_space<vmem>>, vector<8x1xf32>,
      %cst_93 = arith.constant 0.000000e+00 : f32
      %128 = vector.broadcast %cst_93 : f32 to vector<8x1xf32>
      %c0_94 = arith.constant 0 : index
      %c0_95 = arith.constant 0 : index
      %129 = vector.load %arg10[%c0_94, %c0_95] : memref<8x1xf32, #tpu.memory_space<vmem>>, vector<8x1xf32>
      tpu.vector_store %arg10[%c0_94, %c0_95], %128 {strides = array<i32>} : memref<8x1xf32, #tpu.memory_space<vmem>>, vector<8x1xf32>,
    } else {
    }
    %c0 = arith.constant 0 : index
    %c0_1 = arith.constant 0 : index
    %3 = vector.load %arg8[%c0, %c0_1] : memref<8x128xf32, #tpu.memory_space<vmem>>, vector<8x128xf32>
    %c0_2 = arith.constant 0 : index
    %c0_3 = arith.constant 0 : index
    %4 = vector.load %arg5[%c0_2, %c0_3] : memref<128x128xf32, #tpu.memory_space<vmem>>, vector<128x128xf32>
    %cst = arith.constant dense<0.000000e+00> : vector<8x128xf32>
    %5 = tpu.matmul %3, %4, %cst {dimension_numbers = #tpu.dot_dimension_numbers<[1], [1], [0], [0], [0, 0, 1, 0], [], []>} : vector<8x128xf32>, vector<128x128xf32>, vector<8x128xf32> -> vector<8x128xf32>
    %c0_4 = arith.constant 0 : index
    %c0_5 = arith.constant 0 : index
    %6 = vector.load %arg6[%c0_4, %c0_5] : memref<1x128xf32, #tpu.memory_space<vmem>>, vector<1x128xf32>
    %7 = vector.broadcast %6 : vector<1x128xf32> to vector<8x128xf32>
    %8 = arith.addf %5, %7 : vector<8x128xf32>
    %c128_i32 = arith.constant 128 : i32
    %9 = arith.muli %arg1, %c128_i32 : i32
    %10 = tpu.assume_multiple %9, 128 : i32
    %c0_6 = arith.constant 0 : index
    %11 = arith.index_cast %10 : i32 to index
    %12 = vector.load %arg7[%c0_6, %11] : memref<8x512xf32, #tpu.memory_space<vmem>>, vector<8x128xf32>
    tpu.vector_store %arg7[%c0_6, %11], %8 {strides = array<i32>} : memref<8x512xf32, #tpu.memory_space<vmem>>, vector<8x128xf32>,
    %c0_7 = arith.constant 0 : index
    %c0_8 = arith.constant 0 : index
    %13 = vector.load %arg9[%c0_7, %c0_8] : memref<8x1xf32, #tpu.memory_space<vmem>>, vector<8x1xf32>
    %cst_9 = arith.constant dense<0xFF800000> : vector<8xf32>
    %14 = vector.multi_reduction <maximumf>, %8, %cst_9 [1] : vector<8x128xf32> to vector<8xf32>
    %15 = vector.shape_cast %14 : vector<8xf32> to vector<8x1xf32>
    %16 = arith.maximumf %13, %15 : vector<8x1xf32>
    %c0_10 = arith.constant 0 : index
    %c0_11 = arith.constant 0 : index
    %17 = vector.load %arg10[%c0_10, %c0_11] : memref<8x1xf32, #tpu.memory_space<vmem>>, vector<8x1xf32>
    %18 = arith.subf %13, %16 : vector<8x1xf32>
    %19 = math.exp %18 : vector<8x1xf32>
    %20 = arith.mulf %17, %19 : vector<8x1xf32>
    %21 = vector.broadcast %16 : vector<8x1xf32> to vector<8x128xf32>
    %22 = arith.subf %8, %21 : vector<8x128xf32>
    %23 = math.exp %22 : vector<8x128xf32>
    %cst_12 = arith.constant dense<0.000000e+00> : vector<8xf32>
    %24 = vector.multi_reduction <add>, %23, %cst_12 [1] : vector<8x128xf32> to vector<8xf32>
    %25 = vector.shape_cast %24 : vector<8xf32> to vector<8x1xf32>
    %26 = arith.addf %20, %25 : vector<8x1xf32>
    %c0_13 = arith.constant 0 : index
    %c0_14 = arith.constant 0 : index
    %27 = vector.load %arg10[%c0_13, %c0_14] : memref<8x1xf32, #tpu.memory_space<vmem>>, vector<8x1xf32>
    tpu.vector_store %arg10[%c0_13, %c0_14], %26 {strides = array<i32>} : memref<8x1xf32, #tpu.memory_space<vmem>>, vector<8x1xf32>,
    %c0_15 = arith.constant 0 : index
    %c0_16 = arith.constant 0 : index
    %28 = vector.load %arg9[%c0_15, %c0_16] : memref<8x1xf32, #tpu.memory_space<vmem>>, vector<8x1xf32>
    tpu.vector_store %arg9[%c0_15, %c0_16], %16 {strides = array<i32>} : memref<8x1xf32, #tpu.memory_space<vmem>>, vector<8x1xf32>,
    %c3_i32 = arith.constant 3 : i32
    %29 = arith.cmpi eq, %arg1, %c3_i32 : i32
    %30 = arith.extui %29 : i1 to i32
    %c0_i32_17 = arith.constant 0 : i32
    %31 = arith.cmpi ne, %30, %c0_i32_17 : i32
    scf.if %31 {
      %c0_18 = arith.constant 0 : index
      %c0_19 = arith.constant 0 : index
      %32 = vector.load %arg9[%c0_18, %c0_19] : memref<8x1xf32, #tpu.memory_space<vmem>>, vector<8x1xf32>
      %c0_20 = arith.constant 0 : index
      %c0_21 = arith.constant 0 : index
      %33 = vector.load %arg10[%c0_20, %c0_21] : memref<8x1xf32, #tpu.memory_space<vmem>>, vector<8x1xf32>
      %34 = math.log %33 : vector<8x1xf32>
      %35 = arith.addf %32, %34 : vector<8x1xf32>
      %c0_22 = arith.constant 0 : index
      %c0_23 = arith.constant 0 : index
      %36 = vector.load %arg7[%c0_22, %c0_23] : memref<8x512xf32, #tpu.memory_space<vmem>>, vector<8x512xf32>
      %37 = vector.broadcast %35 : vector<8x1xf32> to vector<8x512xf32>
      %38 = arith.subf %36, %37 : vector<8x512xf32>
      %c0_24 = arith.constant 0 : index
      %c0_25 = arith.constant 0 : index
      %39 = vector.load %arg7[%c0_24, %c0_25] : memref<8x512xf32, #tpu.memory_space<vmem>>, vector<8x512xf32>
      tpu.vector_store %arg7[%c0_24, %c0_25], %38 {strides = array<i32>} : memref<8x512xf32, #tpu.memory_space<vmem>>, vector<8x512xf32>,
    } else {
    }
    return
  }
  func.func @transform_1(%arg0: i32, %arg1: i32, %arg2: memref<8xi32, #tpu.memory_space<smem>>) -> (i32, i32) {
    %c0_i32 = arith.constant 0 : i32
    %c0_i32_0 = arith.constant 0 : i32
    %c0_i32_1 = arith.constant 0 : i32
    return %c0_i32, %c0_i32_0 : i32, i32
  }
  func.func @transform_2(%arg0: i32, %arg1: i32, %arg2: memref<8xi32, #tpu.memory_space<smem>>) -> (i32, i32) {
    %c0_i32 = arith.constant 0 : i32
    %c0_i32_0 = arith.constant 0 : i32
    return %arg1, %c0_i32 : i32, i32
  }
  func.func @transform_3(%arg0: i32, %arg1: i32, %arg2: memref<8xi32, #tpu.memory_space<smem>>) -> (i32, i32) {
    %c0_i32 = arith.constant 0 : i32
    %c0_i32_0 = arith.constant 0 : i32
    return %c0_i32, %arg1 : i32, i32
  }
  func.func @transform_4(%arg0: i32, %arg1: i32, %arg2: memref<8xi32, #tpu.memory_space<smem>>) -> (i32, i32) {
    %c0_i32 = arith.constant 0 : i32
    %c0_i32_0 = arith.constant 0 : i32
    return %arg0, %c0_i32 : i32, i32
  }
}

</mosaic_0001>

<bundles_post_ra>
// kernel: tpu_custom_call.1
= control target key start
LH: loop header
LB: loop body
LE: loop exit
PB: predicated region body
PF: predicated region fallthrough
CT: control target
= control target key end

     0   :  { %s1601_s0 = inlined_call_operand.hbm [shape: s32[8], index: 0, kind: input, shape index: {}]   ;;  %s1602_s1 = inlined_call_operand.hbm [shape: f32[512,128], index: 1, kind: input, shape index: {}]   ;;  %s1603_s2 = inlined_call_operand.vmem [shape: f32[1,128], index: 2, kind: input, shape index: {}]   ;;  %s1604_s3 = inlined_call_operand.hbm [shape: f32[512,128], index: 3, kind: input, shape index: {}]   ;;  %s1605_s4 = inlined_call_operand.vmem [shape: f32[1,512], index: 4, kind: input, shape index: {}]   ;;  %s1606_s5 = inlined_call_operand.hbm [shape: f32[8,512], index: 5, kind: output, shape index: {}]  }
   0x1   :  { %1609 = sst [smem:[#allocation42_spill]] %s1604_s3  ;;  %s891_s20 = scalar_lea.hbm %s1601_s0, 16 }
   0x2   :  { %p892_p0 = scmp.ne.s32.totalorder %s1601_s0, %s891_s20  ;;  %p895_p1 = scmp.lt.u32.totalorder %s891_s20, %s1601_s0 }
   0x4   :  { %p897_p2 = pnand %p895_p1, %p892_p0 }
   0x6   :  { %900 = shalt.err (!%p897_p2)  }
   0x7   :  { %s1223_s25 = smov [#allocation7]  }
   0x8   :  { %11 = dma.hbm_to_smem %s1601_s0, 16, %s1223_s25, [#allocation6] }
   0x9   :  { %1173 = dma.done.wait [#allocation6], 16 }
   0xa   :  { %1174 = vsyncadd [#allocation6], 4294967280 }
   0xb   :  { %13 = sfence }
   0xc   :  { %14 = vsyncpa [#allocation9], 0 }
   0xd   :  { %16 = vsyncpa [#allocation9 + $0x1], 0 }
   0xe   :  { %17 = vsyncpa [#allocation10], 0  ;;  %s1285_s28 = smov 0   ;;  %s1287_s29 = smov 0  }
   0xf   :  { %s1289_s30 = smov 0   ;;  %s1291_s6 = smov 0  }
  0x10   :  { %s1293_s7 = smov 0   ;;  %s1295_s8 = smov 0  }
  0x11 LB: > { %s1607_s0 = sadd.s32 4294967295, %s1221_s8   ;;  %s32_s9 = sadd.s32 1, %s1217_s7  ;;  %s1221_s8 = sphi %s1295_s8, %s23_s8   ;;  %s1217_s7 = sphi %s1293_s7, %s1623_s7   ;;  %s1213_s6 = sphi %s1291_s6, %s1622_s6   ;;  %s1209_s30 = sphi %s1289_s30, %s1621_s30   ;;  %s1205_s29 = sphi %s1287_s29, %s1620_s29   ;;  %s1201_s28 = sphi %s1285_s28, %s1619_s28  }
  0x12   : > { %p33_p3 = scmp.ge.s32.totalorder %s32_s9, 4  ;;  %s63_s10 = sadd.s32 1, %s1209_s30 }
  0x13   : > { %p70_p4 = scmp.ne.s32.totalorder %s1209_s30, %s1205_s29  ;;  %p71_p5 = scmp.eq.s32.totalorder %s1221_s8, 0 }
  0x14   : > { %s1625_s9 = smov (%p33_p3, %s32_s9), 0  ;;  %p76_p7 = scmp.ne.s32.totalorder %s1205_s29, %s1201_s28 }
  0x15   : > { %1610 = sst [smem:[#allocation41_spill]] %s1625_s9  ;;  %p1321_p6 = por %p71_p5, %p70_p4 }
  0x16   : > { %s60_s12 = ssub.s32 %s1217_s7, %s1625_s9  ;;  %p77_p8 = scmp.eq.s32.totalorder %s1607_s0, 0 }
  0x17   : > { %p61_p9 = scmp.eq.s32.totalorder %s60_s12, 0  ;;  %p813_p11 = scmp.lt.s32.totalorder %s1221_s8, 4 }
  0x18   : > { %p1330_p10 = por %p77_p8, %p76_p7  ;;  %s155_s15 = sand.u32 1, %s1209_s30  }
  0x19   : > { %s1336_s14 = scalar_select %p61_p9, %s1209_s30, %s63_s10  }
  0x1a   : > { %s726_s16 = sshll.u32 %s1217_s7, 11  ;;  %s688_s17 = sshll.u32 %s155_s15, 7 }
  0x1b   : > { %s1613_s3 = sld [smem:[#allocation42_spill]]  ;;  %s159_s21 = scalar_lea.vmem [#allocation8], %s688_s17 }
  0x1c   : > { %s166_s22 = sshll.u32 %s159_s21, 4  ;;  %p1347_p12 = pnand %p813_p11, %p1321_p6  ;;  %s1351_s22 = int_to_ptr.vmem [resolvable:$true] %s166_s22 }
  0x1d   : > { %s1353_s24 = scalar_lea.sflag [#allocation9], %s155_s15 }
  0x1e   : > { %p903_p0 = pneg %p1347_p12 }
  0x21   : > { %s1343_s20 = scalar_lea.hbm %s1613_s3, %s726_s16  ;;  %s906_s28 = scalar_lea.hbm %s1613_s3, 8192 }
  0x22   : > { %s901_s25 = scalar_lea.hbm %s1343_s20, 2048  ;;  %p907_p3 = scmp.lt.u32.totalorder %s1343_s20, %s1613_s3 }
  0x23   : > { %p902_p13 = scmp.ne.s32.totalorder %s1343_s20, %s901_s25  ;;  %p908_p4 = scmp.lt.u32.totalorder %s906_s28, %s901_s25 }
  0x24   : > { %p910_p6 = scmp.lt.u32.totalorder %s901_s25, %s1343_s20 }
  0x25   : > { %p904_p1 = pnand %p903_p0, %p902_p13  ;;  %p909_p5 = por %p908_p4, %p907_p3 }
  0x27   : > { %p905_p2 = pneg %p904_p1  ;;  %p911_p7 = por %p910_p6, %p909_p5 }
  0x29   : > { %p912_p8 = pnand %p911_p7, %p905_p2 }
  0x2b   : > { %915 = shalt.err (!%p912_p8)
}
  0x2c   : > { %s916_s12 = scalar_lea.vmem %s1351_s22, 2048  ;;  %s1224_s15 = smov [#allocation8]  }
  0x2d   : > { %p917_p9 = scmp.ne.s32.totalorder %s1351_s22, %s916_s12  ;;  %s921_s16 = sshll.u32 %s1224_s15, 4  ;;  %s922_s16 = int_to_ptr.vmem [resolvable:$false] %s921_s16 }
  0x2e   : > { %s923_s17 = scalar_lea.vmem %s922_s16, 4096  ;;  %p924_p1 = scmp.lt.s32.totalorder %s1351_s22, %s922_s16 }
  0x2f   : > { %p919_p11 = pnand %p917_p9, %p903_p0  ;;  %p925_p3 = scmp.lt.s32.totalorder %s923_s17, %s916_s12 }
  0x31   : > { %p920_p13 = pneg %p919_p11  ;;  %p926_p4 = por %p925_p3, %p924_p1 }
  0x33   : > { %p927_p5 = pnand %p926_p4, %p920_p13 }
  0x35   : > { %930 = shalt.err (!%p927_p5)
}
  0x36   : > { %s1225_s18 = smov 128   ;;  %s1226_s19 = smov 8  }
  0x37   : > { %812 = dma.hbm_to_vmem [thread:$0]  (!%p1347_p12), %s1343_s20, 2048, %s1351_s22, %s1353_s24, %s1225_s18, %s1225_s18, %s1226_s19  }
  0x38   : > { %p691_p0 = scmp.ge.s32.totalorder %s1221_s8, 1  ;;  %p180_p2 = scmp.lt.s32.totalorder %s1221_s8, 5 }
  0x3a   : > { %p181_p6 = pnand %p691_p0, %p180_p2 }
  0x3b   : > { %s186_s21 = sand.u32 (!%p181_p6), 1, %s1205_s29  }
  0x3c   : > { %184 = sbr.rel (%p181_p6) target bundleno = 1157 (0x485), region = 32  ;;  %s692_s25 = sshll.u32 (!%p181_p6), %s186_s21, 7 }
  0x3d   : > { %s187_s26 = scalar_lea.sflag (!%p181_p6), [#allocation9], %s186_s21  ;;  %s1384_s27 = scalar_lea.vmem (!%p181_p6), [#allocation8], %s692_s25 }
  0x43   : > { %1176 = dma.done.wait (%p1330_p10), %s187_s26, 2048  }
  0x44   : > { %1178 = vsyncadd (%p1330_p10), %s187_s26, 4294965248  ;;  %p212_p7 = scmp.lt.s32.totalorder %s1213_s6, 3  ;;  %p693_p12 = scmp.ne.s32.totalorder %s1213_s6, 0 }
  0x45   : > { %s220_s28 = sld [smem:[#allocation7]] (!%p693_p12)  ;;  %s1227_s10 = smov (!%p693_p12), [#allocation2]  }
  0x46   : > { %s1392_s20 = scalar_select %p212_p7, %s1213_s6, 3 }
  0x47   : > { %218 = sbr.rel (%p693_p12) target bundleno = 266 (0x10a), region = 40  ;;  %s230_s11 = sshll.u32 (!%p693_p12), %s1227_s10, 4  ;;  %s1401_s11 = int_to_ptr.vmem [resolvable:$true] %s230_s11 }
  0x48   : > { %s1399_s12 = sld [smem:[#allocation7 + $0x1]] (!%p693_p12)  ;;  %s1228_s13 = smov (!%p693_p12), [#allocation2 + $0x1]  }
  0x49   : > { %s247_s15 = sshll.u32 (!%p693_p12), %s1228_s13, 4  ;;  %s1403_s16 = sld [smem:[#allocation7 + $0x2]] (!%p693_p12)  ;;  %s1405_s15 = int_to_ptr.vmem [resolvable:$true] %s247_s15 }
  0x4a   : > { %s1229_s17 = smov (!%p693_p12), [#allocation2 + $0x2]   ;;  %s1407_s19 = sld [smem:[#allocation7 + $0x3]] (!%p693_p12) }
  0x4b   : > { %s264_s18 = sshll.u32 (!%p693_p12), %s1229_s17, 4  ;;  %s694_s21 = sshll.u32 (!%p693_p12), %s220_s28, 4  ;;  %s1409_s18 = int_to_ptr.vmem [resolvable:$true] %s264_s18 }
  0x4c   : > { %s222_s22 = scalar_lea.hbm (!%p693_p12), %s1602_s1, %s694_s21  ;;  %s1418_s24 = scalar_lea.hbm (!%p693_p12), %s1602_s1, 8192 }
  0x4d   : > { %s931_s10 = scalar_lea.hbm (!%p693_p12), %s222_s22, 16  ;;  %p934_p8 = scmp.lt.u32.totalorder (!%p693_p12), %s222_s22, %s1602_s1 }
  0x4e   : > { %s696_s23 = sshll.u32 %s1399_s12, 4  ;;  %p932_p10 = scmp.ne.s32.totalorder %s222_s22, %s931_s10 }
  0x4f   : > { %p935_p9 = scmp.lt.u32.totalorder %s1418_s24, %s931_s10  ;;  %p937_p13 = scmp.lt.u32.totalorder %s931_s10, %s222_s22 }
  0x51   : > { %p936_p11 = por %p935_p9, %p934_p8 }
  0x53   : > { %p938_p1 = por %p937_p13, %p936_p11 }
  0x55   : > { %p939_p3 = pnand %p938_p1, %p932_p10 }
  0x57   : > { %942 = shalt.err (!%p939_p3)  }
  0x58   : > { %s943_s28 = scalar_lea.vmem %s1401_s11, 16  ;;  %s1427_s0 = scalar_lea.vmem %s1401_s11, 128 }
  0x59   : > { %p944_p4 = scmp.ne.s32.totalorder %s1401_s11, %s943_s28  ;;  %p948_p5 = scmp.lt.s32.totalorder %s1401_s11, %s1401_s11 }
  0x5a   : > { %p949_p0 = scmp.lt.s32.totalorder %s1427_s0, %s943_s28 }
  0x5c   : > { %p950_p2 = por %p949_p0, %p948_p5 }
  0x5e   : > { %p951_p6 = pnand %p950_p2, %p944_p4 }
  0x60   : > { %954 = shalt.err (!%p951_p6)  }
  0x61   : > { %233 = dma.hbm_to_vmem [thread:$0]  %s222_s22, 16, %s1401_s11, [#allocation5] }
  0x62   : > { %s237_s12 = scalar_lea.hbm %s1602_s1, %s696_s23  ;;  %s698_s17 = sshll.u32 %s1403_s16, 4 }
  0x63   : > { %s955_s21 = scalar_lea.hbm %s237_s12, 16  ;;  %p958_p12 = scmp.lt.u32.totalorder %s237_s12, %s1602_s1 }
  0x64   : > { %p956_p7 = scmp.ne.s32.totalorder %s237_s12, %s955_s21  ;;  %p959_p10 = scmp.lt.u32.totalorder %s1418_s24, %s955_s21 }
  0x65   : > { %p961_p9 = scmp.lt.u32.totalorder %s955_s21, %s237_s12 }
  0x66   : > { %p960_p8 = por %p959_p10, %p958_p12 }
  0x68   : > { %p962_p11 = por %p961_p9, %p960_p8 }
  0x6a   : > { %p963_p13 = pnand %p962_p11, %p956_p7 }
  0x6c   : > { %966 = shalt.err (!%p963_p13)  }
  0x6d   : > { %s967_s22 = scalar_lea.vmem %s1405_s15, 16  ;;  %p972_p3 = scmp.lt.s32.totalorder %s1405_s15, %s1401_s11 }
  0x6e   : > { %p968_p1 = scmp.ne.s32.totalorder %s1405_s15, %s967_s22  ;;  %p973_p4 = scmp.lt.s32.totalorder %s1427_s0, %s967_s22 }
  0x70   : > { %p974_p5 = por %p973_p4, %p972_p3 }
  0x72   : > { %p975_p0 = pnand %p974_p5, %p968_p1 }
  0x74   : > { %978 = shalt.err (!%p975_p0)  }
  0x75   : > { %250 = dma.hbm_to_vmem [thread:$0]  %s237_s12, 16, %s1405_s15, [#allocation5 + $0x1] }
  0x76   : > { %s254_s10 = scalar_lea.hbm %s1602_s1, %s698_s17  ;;  %s700_s13 = sshll.u32 %s1407_s19, 4 }
  0x77   : > { %s979_s28 = scalar_lea.hbm %s254_s10, 16  ;;  %p982_p6 = scmp.lt.u32.totalorder %s254_s10, %s1602_s1 }
  0x78   : > { %p980_p2 = scmp.ne.s32.totalorder %s254_s10, %s979_s28  ;;  %p983_p7 = scmp.lt.u32.totalorder %s1418_s24, %s979_s28 }
  0x79   : > { %p985_p10 = scmp.lt.u32.totalorder %s979_s28, %s254_s10 }
  0x7a   : > { %p984_p12 = por %p983_p7, %p982_p6 }
  0x7c   : > { %p986_p8 = por %p985_p10, %p984_p12 }
  0x7e   : > { %p987_p9 = pnand %p986_p8, %p980_p2 }
  0x80   : > { %990 = shalt.err (!%p987_p9)  }
  0x81   : > { %s991_s15 = scalar_lea.vmem %s1409_s18, 16  ;;  %p996_p13 = scmp.lt.s32.totalorder %s1409_s18, %s1401_s11 }
  0x82   : > { %p992_p11 = scmp.ne.s32.totalorder %s1409_s18, %s991_s15  ;;  %p997_p1 = scmp.lt.s32.totalorder %s1427_s0, %s991_s15 }
  0x84   : > { %p998_p3 = por %p997_p1, %p996_p13 }
  0x86   : > { %p999_p4 = pnand %p998_p3, %p992_p11 }
  0x88   : > { %1002 = shalt.err (!%p999_p4)  }
  0x89   : > { %267 = dma.hbm_to_vmem [thread:$0]  %s254_s10, 16, %s1409_s18, [#allocation5 + $0x2] }
  0x8a   : > { %s271_s17 = scalar_lea.hbm %s1602_s1, %s700_s13  ;;  %s1230_s21 = smov [#allocation2 + $0x3]  }
  0x8b   : > { %s281_s25 = sshll.u32 %s1230_s21, 4  ;;  %s1464_s26 = sld [smem:[#allocation7 + $0x4]]  ;;  %s282_s25 = int_to_ptr.vmem [resolvable:$true] %s281_s25 }
  0x8c   : > { %s1003_s22 = scalar_lea.hbm %s271_s17, 16  ;;  %p1006_p0 = scmp.lt.u32.totalorder %s271_s17, %s1602_s1 }
  0x8d   : > { %p1004_p5 = scmp.ne.s32.totalorder %s271_s17, %s1003_s22  ;;  %p1007_p2 = scmp.lt.u32.totalorder %s1418_s24, %s1003_s22 }
  0x8e   : > { %p1009_p7 = scmp.lt.u32.totalorder %s1003_s22, %s271_s17 }
  0x8f   : > { %p1008_p6 = por %p1007_p2, %p1006_p0 }
  0x91   : > { %p1010_p12 = por %p1009_p7, %p1008_p6 }
  0x93   : > { %p1011_p10 = pnand %p1010_p12, %p1004_p5 }
  0x95   : > { %1014 = shalt.err (!%p1011_p10)  }
  0x96   : > { %s1015_s18 = scalar_lea.vmem %s282_s25, 16  ;;  %p1020_p9 = scmp.lt.s32.totalorder %s282_s25, %s1401_s11 }
  0x97   : > { %p1016_p8 = scmp.ne.s32.totalorder %s282_s25, %s1015_s18  ;;  %p1021_p11 = scmp.lt.s32.totalorder %s1427_s0, %s1015_s18 }
  0x99   : > { %p1022_p13 = por %p1021_p11, %p1020_p9 }
  0x9b   : > { %p1023_p1 = pnand %p1022_p13, %p1016_p8 }
  0x9d   : > { %1026 = shalt.err (!%p1023_p1)  }
  0x9e   : > { %284 = dma.hbm_to_vmem [thread:$0]  %s271_s17, 16, %s282_s25, [#allocation5 + $0x3] }
  0x9f   : > { %s1231_s10 = smov [#allocation2 + $0x4]   ;;  %s1472_s28 = sld [smem:[#allocation7 + $0x5]] }
  0xa0   : > { %s298_s13 = sshll.u32 %s1231_s10, 4  ;;  %s1232_s3 = smov [#allocation2 + $0x5]   ;;  %s299_s13 = int_to_ptr.vmem [resolvable:$true] %s298_s13 }
  0xa1   : > { %s315_s9 = sshll.u32 %s1232_s3, 4  ;;  %s1474_s15 = sld [smem:[#allocation7 + $0x6]]  ;;  %s1477_s9 = int_to_ptr.vmem [resolvable:$true] %s315_s9 }
  0xa2   : > { %s702_s19 = sshll.u32 %s1464_s26, 4 }
  0xa3   : > { %s288_s22 = scalar_lea.hbm %s1602_s1, %s702_s19 }
  0xa4   : > { %s1027_s16 = scalar_lea.hbm %s288_s22, 16  ;;  %p1030_p4 = scmp.lt.u32.totalorder %s288_s22, %s1602_s1 }
  0xa5   : > { %p1028_p3 = scmp.ne.s32.totalorder %s288_s22, %s1027_s16  ;;  %p1031_p5 = scmp.lt.u32.totalorder %s1418_s24, %s1027_s16 }
  0xa6   : > { %p1033_p2 = scmp.lt.u32.totalorder %s1027_s16, %s288_s22 }
  0xa7   : > { %p1032_p0 = por %p1031_p5, %p1030_p4 }
  0xa9   : > { %p1034_p6 = por %p1033_p2, %p1032_p0 }
  0xab   : > { %p1035_p7 = pnand %p1034_p6, %p1028_p3 }
  0xad   : > { %1038 = shalt.err (!%p1035_p7)  }
  0xae   : > { %s1039_s23 = scalar_lea.vmem %s299_s13, 16  ;;  %p1044_p10 = scmp.lt.s32.totalorder %s299_s13, %s1401_s11 }
  0xaf   : > { %p1040_p12 = scmp.ne.s32.totalorder %s299_s13, %s1039_s23  ;;  %p1045_p8 = scmp.lt.s32.totalorder %s1427_s0, %s1039_s23 }
  0xb1   : > { %p1046_p9 = por %p1045_p8, %p1044_p10 }
  0xb3   : > { %p1047_p11 = pnand %p1046_p9, %p1040_p12 }
  0xb5   : > { %1050 = shalt.err (!%p1047_p11)  }
  0xb6   : > { %301 = dma.hbm_to_vmem [thread:$0]  %s288_s22, 16, %s299_s13, [#allocation5 + $0x4] }
  0xb7   : > { %s704_s26 = sshll.u32 %s1472_s28, 4  ;;  %s1233_s18 = smov [#allocation2 + $0x6]  }
  0xb8   : > { %s332_s10 = sshll.u32 %s1233_s18, 4  ;;  %s305_s12 = scalar_lea.hbm %s1602_s1, %s704_s26  ;;  %s1492_s10 = int_to_ptr.vmem [resolvable:$true] %s332_s10 }
  0xb9   : > { %s1051_s21 = scalar_lea.hbm %s305_s12, 16  ;;  %p1054_p1 = scmp.lt.u32.totalorder %s305_s12, %s1602_s1 }
  0xba   : > { %p1052_p13 = scmp.ne.s32.totalorder %s305_s12, %s1051_s21  ;;  %p1055_p3 = scmp.lt.u32.totalorder %s1418_s24, %s1051_s21 }
  0xbb   : > { %p1057_p5 = scmp.lt.u32.totalorder %s1051_s21, %s305_s12 }
  0xbc   : > { %p1056_p4 = por %p1055_p3, %p1054_p1 }
  0xbe   : > { %p1058_p0 = por %p1057_p5, %p1056_p4 }
  0xc0   : > { %p1059_p2 = pnand %p1058_p0, %p1052_p13 }
  0xc2   : > { %1062 = shalt.err (!%p1059_p2)  }
  0xc3   : > { %s1063_s13 = scalar_lea.vmem %s1477_s9, 16  ;;  %p1068_p7 = scmp.lt.s32.totalorder %s1477_s9, %s1401_s11 }
  0xc4   : > { %p1064_p6 = scmp.ne.s32.totalorder %s1477_s9, %s1063_s13  ;;  %p1069_p12 = scmp.lt.s32.totalorder %s1427_s0, %s1063_s13 }
  0xc6   : > { %p1070_p10 = por %p1069_p12, %p1068_p7 }
  0xc8   : > { %p1071_p8 = pnand %p1070_p10, %p1064_p6 }
  0xca   : > { %1074 = shalt.err (!%p1071_p8)  }
  0xcb   : > { %318 = dma.hbm_to_vmem [thread:$0]  %s305_s12, 16, %s1477_s9, [#allocation5 + $0x5] }
  0xcc   : > { %s706_s28 = sshll.u32 %s1474_s15, 4  ;;  %s707_s22 = sld [smem:[#allocation7 + $0x7]] }
  0xcd   : > { %s322_s26 = scalar_lea.hbm %s1602_s1, %s706_s28 }
  0xce   : > { %s1075_s18 = scalar_lea.hbm %s322_s26, 16  ;;  %p1078_p11 = scmp.lt.u32.totalorder %s322_s26, %s1602_s1 }
  0xcf   : > { %p1076_p9 = scmp.ne.s32.totalorder %s322_s26, %s1075_s18  ;;  %p1079_p13 = scmp.lt.u32.totalorder %s1418_s24, %s1075_s18 }
  0xd0   : > { %p1081_p3 = scmp.lt.u32.totalorder %s1075_s18, %s322_s26 }
  0xd1   : > { %p1080_p1 = por %p1079_p13, %p1078_p11 }
  0xd3   : > { %p1082_p4 = por %p1081_p3, %p1080_p1 }
  0xd5   : > { %p1083_p5 = pnand %p1082_p4, %p1076_p9 }
  0xd7   : > { %1086 = shalt.err (!%p1083_p5)  }
  0xd8   : > { %s1087_s9 = scalar_lea.vmem %s1492_s10, 16  ;;  %p1092_p2 = scmp.lt.s32.totalorder %s1492_s10, %s1401_s11 }
  0xd9   : > { %p1088_p0 = scmp.ne.s32.totalorder %s1492_s10, %s1087_s9  ;;  %p1093_p6 = scmp.lt.s32.totalorder %s1427_s0, %s1087_s9 }
  0xdb   : > { %p1094_p7 = por %p1093_p6, %p1092_p2 }
  0xdd   : > { %p1095_p12 = pnand %p1094_p7, %p1088_p0 }
  0xdf   : > { %1098 = shalt.err (!%p1095_p12)  }
  0xe0   : > { %335 = dma.hbm_to_vmem [thread:$0]  %s322_s26, 16, %s1492_s10, [#allocation5 + $0x6] }
  0xe1   : > { %s1234_s15 = smov [#allocation2 + $0x7]   ;;  %s708_s21 = sshll.u32 %s707_s22, 4 }
  0xe2   : > { %s349_s12 = sshll.u32 %s1234_s15, 4  ;;  %s339_s13 = scalar_lea.hbm %s1602_s1, %s708_s21  ;;  %s350_s12 = int_to_ptr.vmem [resolvable:$true] %s349_s12 }
  0xe3   : > { %s1099_s28 = scalar_lea.hbm %s339_s13, 16  ;;  %p1102_p8 = scmp.lt.u32.totalorder %s339_s13, %s1602_s1 }
  0xe4   : > { %p1100_p10 = scmp.ne.s32.totalorder %s339_s13, %s1099_s28  ;;  %p1103_p9 = scmp.lt.u32.totalorder %s1418_s24, %s1099_s28 }
  0xe5   : > { %p1105_p13 = scmp.lt.u32.totalorder %s1099_s28, %s339_s13 }
  0xe6   : > { %p1104_p11 = por %p1103_p9, %p1102_p8 }
  0xe8   : > { %p1106_p1 = por %p1105_p13, %p1104_p11 }
  0xea   : > { %p1107_p3 = pnand %p1106_p1, %p1100_p10 }
  0xec   : > { %1110 = shalt.err (!%p1107_p3)  }
  0xed   : > { %s1111_s10 = scalar_lea.vmem %s350_s12, 16  ;;  %p1116_p5 = scmp.lt.s32.totalorder %s350_s12, %s1401_s11 }
  0xee   : > { %p1112_p4 = scmp.ne.s32.totalorder %s350_s12, %s1111_s10  ;;  %p1117_p0 = scmp.lt.s32.totalorder %s1427_s0, %s1111_s10 }
  0xf0   : > { %p1118_p2 = por %p1117_p0, %p1116_p5 }
  0xf2   : > { %p1119_p6 = pnand %p1118_p2, %p1112_p4 }
  0xf4   : > { %1122 = shalt.err (!%p1119_p6)  }
  0xf5   : > { %352 = dma.hbm_to_vmem [thread:$0]  %s339_s13, 16, %s350_s12, [#allocation5 + $0x7] }
  0xf6   : > { %1179 = dma.done.wait [#allocation5], 16 }
  0xf7   : > { %1180 = vsyncadd [#allocation5], 4294967280 }
  0xf8   : > { %1181 = dma.done.wait [#allocation5 + $0x1], 16 }
  0xf9   : > { %1182 = vsyncadd [#allocation5 + $0x1], 4294967280 }
  0xfa   : > { %1183 = dma.done.wait [#allocation5 + $0x2], 16 }
  0xfb   : > { %1184 = vsyncadd [#allocation5 + $0x2], 4294967280 }
  0xfc   : > { %1185 = dma.done.wait [#allocation5 + $0x3], 16 }
  0xfd   : > { %1186 = vsyncadd [#allocation5 + $0x3], 4294967280 }
  0xfe   : > { %1187 = dma.done.wait [#allocation5 + $0x4], 16 }
  0xff   : > { %1188 = vsyncadd [#allocation5 + $0x4], 4294967280 }
 0x100   : > { %1189 = dma.done.wait [#allocation5 + $0x5], 16 }
 0x101   : > { %1190 = vsyncadd [#allocation5 + $0x5], 4294967280 }
 0x102   : > { %1191 = dma.done.wait [#allocation5 + $0x6], 16 }
 0x103   : > { %1192 = vsyncadd [#allocation5 + $0x6], 4294967280 }
 0x104   : > { %1193 = dma.done.wait [#allocation5 + $0x7], 16 }
 0x105   : > { %1194 = vsyncadd [#allocation5 + $0x7], 4294967280  ;;  %vm380_vm0 = vcmask 7168   ;;  %v1235_v0 = vmov -inf   ;;  %v1236_v1 = vmov 0.0   ;;  %v370_v2 = vld [vmem:[#allocation2] sm:$0xff] }
 0x106   : > { %381 = vst.msk [vmem:[#allocation3] sm:$0xff] %vm380_vm0, %v1235_v0  ;;  %382 = vst.msk [vmem:[#allocation4] sm:$0xff] %vm380_vm0, %v1236_v1  ;;  %v709_v3 = vld [vmem:[%s1603_s2] ss:$0 sm:$0xff] }
 0x107   : > { %v378_v4 = vadd.f32 %v709_v3, %v370_v2 }
 0x109   : > { %379 = vst [vmem:[#allocation2] sm:$0xff] %v378_v4 }
 0x10a PF: > { %v384_v5 = vld [vmem:[%s1384_s27] sm:$0xff]  ;;  %v385_v6 = vld [vmem:[%s1384_s27 + $0x8] sm:$0xff]  ;;  %v1237_v7 = vmov 0.0|0.0   ;;  %vm1238_vm1 = vmmov 0   ;;  %v1239_v9 = vmov 0.0   ;;  %v386_v10 = vld [vmem:[%s1384_s27 + $0x10] sm:$0xff]  ;;  %s1615_s19 = scalar_lea.vmem %s1605_s4, %s1392_s20 }
 0x10b   : > { %779 = vmatprep.subr.bf16.mxu0 %v1237_v7  ;;  %v780_v8 = vpack.c.bf16 %v385_v6, %v384_v5  ;;  %776 = vmatprep.mubr.msk.f32.mxu0 %vm1238_vm1, %v1239_v9  ;;  %v387_v11 = vld [vmem:[%s1384_s27 + $0x18] sm:$0xff]  ;;  %v388_v13 = vld [vmem:[%s1384_s27 + $0x20] sm:$0xff]  ;;  %v389_v14 = vld [vmem:[%s1384_s27 + $0x28] sm:$0xff]  ;;  %s711_s0 = sshll.u32 %s1213_s6, 7  ;;  %v1240_v36 = vmov 0   ;;  %vm503_vm2 = vcmask 7168  }
 0x10c   : > { %v783_v12 = vpack.c.bf16 %v387_v11, %v386_v10  ;;  %v786_v15 = vpack.c.bf16 %v389_v14, %v388_v13  ;;  %v390_v16 = vld [vmem:[%s1384_s27 + $0x30] sm:$0xff]  ;;  %v391_v17 = vld [vmem:[%s1384_s27 + $0x38] sm:$0xff]  ;;  %v392_v19 = vld [vmem:[%s1384_s27 + $0x40] sm:$0xff]  ;;  %s478_s22 = sshra.s32 %s711_s0, 7  ;;  %883 = vset.pattern.permute.xlu0 %v1240_v36  ;;  %p713_p7 = scmp.ne.s32.totalorder %s1213_s6, 3 }
 0x10d   : > { %781 = vmatpush3.bf16.xpose.msra.mxu0 %v780_v8  ;;  %v789_v18 = vpack.c.bf16 %v391_v17, %v390_v16  ;;  %v393_v20 = vld [vmem:[%s1384_s27 + $0x48] sm:$0xff]  ;;  %v394_v22 = vld [vmem:[%s1384_s27 + $0x50] sm:$0xff]  ;;  %v395_v23 = vld [vmem:[%s1384_s27 + $0x58] sm:$0xff]  ;;  %s712_s26 = sshll.u32 %s478_s22, 3  ;;  %v1241_v52 = vmov (!%p713_p7), 0  }
 0x10e   : > { %782 = vmatprep.subr.bf16.mxu0 %v1237_v7  ;;  %v792_v21 = vpack.c.bf16 %v393_v20, %v392_v19  ;;  %v795_v24 = vpack.c.bf16 %v395_v23, %v394_v22  ;;  %v396_v25 = vld [vmem:[%s1384_s27 + $0x60] sm:$0xff]  ;;  %v397_v26 = vld [vmem:[%s1384_s27 + $0x68] sm:$0xff]  ;;  %v398_v28 = vld [vmem:[%s1384_s27 + $0x70] sm:$0xff]  ;;  %s481_s9 = scalar_lea.vmem [#allocation11], %s712_s26 }
 0x10f   : > { %v798_v27 = vpack.c.bf16 %v397_v26, %v396_v25  ;;  %v399_v29 = vld [vmem:[%s1384_s27 + $0x78] sm:$0xff]  ;;  %v710_v32 = vld [vmem:[%s1615_s19] ss:$0 sm:$0xff]  ;;  %v483_v37 = vld [vmem:[#allocation3] sm:$0xff] }
 0x110   : > { %v801_v30 = vpack.c.bf16 %v399_v29, %v398_v28  ;;  %v383_v31 = vld [vmem:[#allocation2] sm:$0xff]  ;;  %v487_v47 = vld [vmem:[#allocation4] sm:$0xff] }
 0x115   : > { %784 = vmatpush3.bf16.xpose.msra.mxu0 %v783_v12 }
 0x116   : > { %785 = vmatprep.subr.bf16.mxu0 %v1237_v7 }
 0x11d   : > { %787 = vmatpush3.bf16.xpose.msra.mxu0 %v786_v15 }
 0x11e   : > { %788 = vmatprep.subr.bf16.mxu0 %v1237_v7 }
 0x125   : > { %790 = vmatpush3.bf16.xpose.msra.mxu0 %v789_v18 }
 0x126   : > { %791 = vmatprep.subr.bf16.mxu0 %v1237_v7 }
 0x12d   : > { %793 = vmatpush3.bf16.xpose.msra.mxu0 %v792_v21 }
 0x12e   : > { %794 = vmatprep.subr.bf16.mxu0 %v1237_v7 }
 0x135   : > { %796 = vmatpush3.bf16.xpose.msra.mxu0 %v795_v24 }
 0x136   : > { %797 = vmatprep.subr.bf16.mxu0 %v1237_v7 }
 0x13d   : > { %799 = vmatpush3.bf16.xpose.msra.mxu0 %v798_v27 }
 0x13e   : > { %800 = vmatprep.subr.bf16.mxu0 %v1237_v7 }
 0x145   : > { %802 = vmatpush3.bf16.xpose.msra.mxu0 %v801_v30 }
 0x14c   : > { %777 = vmatmul.mubr.f32.vlgmr.msra.gmra.mrb[0].mxu0 %v383_v31 }
 0x21f   : > { %v473_v33 = vpop.f32.mrb[0].mxu0 }
 0x220   : > { %v474_v34 = vadd.f32 %v710_v32, %v473_v33  ;;  %v778_v35 = vpop.f32.mrb[1].mxu0 }
 0x222   : > { %482 = vst [vmem:[%s481_s9] sm:$0xff] %v474_v34  ;;  %484 = vmax.xlane.f32.xlu0 %v474_v34 }
 0x229   : > { %v515_v57 = vld [vmem:[#allocation11] sm:$0xff] (!%p713_p7)  ;;  %v516_v58 = vld [vmem:[#allocation11 + $0x8] sm:$0xff] (!%p713_p7)  ;;  %v517_v59 = vld [vmem:[#allocation11 + $0x10] sm:$0xff] (!%p713_p7) }
 0x22a   : > { %v518_v60 = vld [vmem:[#allocation11 + $0x18] sm:$0xff] (!%p713_p7) }
 0x2af   : > { %v485_v38 = vpop.xlane.xlu0 %484 }
 0x2b0   : > { %v486_v39 = vmax.f32 %v483_v37, %v485_v38 }
 0x2b2   : > { %v488_v40 = vsub.f32 %v483_v37, %v486_v39  ;;  %505 = vst.msk [vmem:[#allocation3] sm:$0xff] %vm503_vm2, %v486_v39  ;;  %494 = vperm.xlu0 %883, %v486_v39  }
 0x2b4   : > { %v489_v45 = vmul.f32 1.442695, %v488_v40 }
 0x2b6   : > { %888 = vset.pattern.permute.xlu0 (!%p713_p7), %v1241_v52 }
 0x2b9   : > { %v510_v54 = vld [vmem:[#allocation3] sm:$0xff] (!%p713_p7) }
 0x331   : > { %v495_v41 = vpop.permute.xlu0 %494 }
 0x332   : > { %v497_v42 = vsub.f32 %v474_v34, %v495_v41 }
 0x334   : > { %v498_v43 = vmul.f32 1.442695, %v497_v42 }
 0x336   : > { %884 = vpow2.f32 %v498_v43 }
 0x337   : > { %886 = vpow2.f32 %v489_v45 }
 0x340   : > { %v885_v44 = vpop.eup %884 }
 0x341   : > { %500 = vadd.xlane.f32.xlu1 %v885_v44  ;;  %v887_v46 = vpop.eup %886 }
 0x342   : > { %v491_v48 = vmul.f32 %v887_v46, %v487_v47 }
 0x3cb   : > { %509 = sbr.rel (%p713_p7) target bundleno = 1132 (0x46c), region = 76 }
 0x3ce   : > { %v501_v49 = vpop.xlane.xlu1 %500 }
 0x3cf   : > { %v502_v50 = vadd.f32 %v501_v49, %v491_v48 }
 0x3d1   : > { %504 = vst.msk [vmem:[#allocation4] sm:$0xff] %vm503_vm2, %v502_v50 }
 0x3d8   : > { %v511_v51 = vld [vmem:[#allocation4] sm:$0xff] }
 0x3d9   : > { %889 = vlog2.f32 %v511_v51 }
 0x3e3   : > { %v890_v53 = vpop.eup %889 }
 0x3e4   : > { %v513_v55 = vmul.f32 0.6931472, %v890_v53 }
 0x3e6   : > { %v514_v56 = vadd.f32 %v513_v55, %v510_v54 }
 0x3e8   : > { %521 = vperm.xlu0 %888, %v514_v56  }
 0x467   : > { %v522_v61 = vpop.permute.xlu0 %521 }
 0x468   : > { %v524_v62 = vsub.f32 %v515_v57, %v522_v61  ;;  %v525_v63 = vsub.f32 %v516_v58, %v522_v61  ;;  %v526_v0 = vsub.f32 %v517_v59, %v522_v61  ;;  %v527_v1 = vsub.f32 %v518_v60, %v522_v61 }
 0x46a   : > { %528 = vst [vmem:[#allocation11] sm:$0xff] %v524_v62  ;;  %529 = vst [vmem:[#allocation11 + $0x8] sm:$0xff] %v525_v63 }
 0x46b   : > { %530 = vst [vmem:[#allocation11 + $0x10] sm:$0xff] %v526_v0  ;;  %531 = vst [vmem:[#allocation11 + $0x18] sm:$0xff] %v527_v1 }
 0x46c PF: > { %s1616_s6 = sadd.s32 4294967295, %s1221_s8   ;;  %s1242_s20 = smov [#allocation11]  }
 0x46d   : > { %p1557_p12 = scmp.eq.s32.totalorder %s1616_s6, 3  ;;  %s542_s15 = sshll.u32 %s1242_s20, 4  ;;  %s543_s15 = int_to_ptr.vmem [resolvable:$true] %s542_s15 }
 0x46e   : > { %s1123_s12 = scalar_lea.vmem %s543_s15, 512  ;;  %p1130_p11 = scmp.lt.s32.totalorder %s543_s15, %s543_s15 }
 0x46f   : > { %p1124_p10 = scmp.ne.s32.totalorder %s543_s15, %s1123_s12  ;;  %p1131_p13 = scmp.lt.s32.totalorder %s1123_s12, %s1123_s12 }
 0x471   : > { %p1125_p8 = pnand %p1124_p10, %p1557_p12  ;;  %p1132_p1 = por %p1131_p13, %p1130_p11 }
 0x473   : > { %p1126_p9 = pneg %p1125_p8 }
 0x475   : > { %p1133_p3 = pnand %p1132_p1, %p1126_p9 }
 0x477   : > { %1136 = shalt.err (!%p1133_p3)
}
 0x478   : > { %s1137_s17 = scalar_lea.hbm %s1606_s5, 512 }
 0x479   : > { %p1138_p4 = scmp.ne.s32.totalorder %s1606_s5, %s1137_s17  ;;  %p1143_p2 = scmp.lt.u32.totalorder %s1137_s17, %s1606_s5 }
 0x47b   : > { %p1139_p5 = pnand %p1138_p4, %p1557_p12 }
 0x47d   : > { %p1140_p0 = pneg %p1139_p5 }
 0x47f   : > { %p1145_p6 = pnand %p1143_p2, %p1140_p0 }
 0x481   : > { %1148 = shalt.err (!%p1145_p6)
}
 0x482   : > { %806 = dma.vmem_to_hbm [thread:$0]  (%p1557_p12), %s543_s15, 512, %s1606_s5, [#allocation10]  }
 0x483   : > { %1196 = dma.done.wait (%p1557_p12), [#allocation10], 512  }
 0x484   : > { %1198 = vsyncadd (%p1557_p12), [#allocation10], 4294966784 }
 0x485 PF: > { %s23_s8 = sadd.s32 1, %s1221_s8   ;;  %s1618_s11 = sld [smem:[#allocation41_spill]] }
 0x486   : > { %p20_p7 = scmp.ge.s32.totalorder %s23_s8, 6   ;;  %s1619_s28 = smov %s1205_s29 }
 0x487   : > { %s1620_s29 = smov %s1209_s30  ;;  %s1621_s30 = smov %s1336_s14 }
 0x488   : > { %s1622_s6 = smov %s1217_s7  ;;  %22 = sbr.rel (!%p20_p7) target bundleno = 17 (0x11), region = 143 }
 0x48b   : > { %s1623_s7 = smov %s1618_s11 }
 0x48f   :  { %555 = vsyncpa [#allocation9], 1 }
 0x490   :  { %557 = vsyncpa [#allocation9 + $0x1], 1 }
 0x491   :  { %558 = vsyncpa [#allocation10], 1 }
 0x492   :  { %560 = vsyncpa [#allocation10 + $0x1], 1 }
 0x493   :  { %561 = vsyncmov [#allocation5] }
 0x496   :  { %s562_s0 = vpop.sfrf %561 }
 0x497   :  { %p718_p12 = scmp.ne.s32.totalorder %s562_s0, 0 }
 0x499   :  { %566 = shalt.err (%p718_p12)  }
 0x49a   :  { %568 = vsyncmov [#allocation5 + $0x1] }
 0x49d   :  { %s569_s22 = vpop.sfrf %568 }
 0x49e   :  { %p719_p10 = scmp.ne.s32.totalorder %s569_s22, 0 }
 0x4a0   :  { %573 = shalt.err (%p719_p10)  }
 0x4a1   :  { %575 = vsyncmov [#allocation5 + $0x2] }
 0x4a4   :  { %s576_s14 = vpop.sfrf %575 }
 0x4a5   :  { %p720_p8 = scmp.ne.s32.totalorder %s576_s14, 0 }
 0x4a7   :  { %580 = shalt.err (%p720_p8)  }
 0x4a8   :  { %582 = vsyncmov [#allocation5 + $0x3] }
 0x4ab   :  { %s583_s26 = vpop.sfrf %582 }
 0x4ac   :  { %p721_p9 = scmp.ne.s32.totalorder %s583_s26, 0 }
 0x4ae   :  { %587 = shalt.err (%p721_p9)  }
 0x4af   :  { %589 = vsyncmov [#allocation5 + $0x4] }
 0x4b2   :  { %s590_s1 = vpop.sfrf %589 }
 0x4b3   :  { %p722_p11 = scmp.ne.s32.totalorder %s590_s1, 0 }
 0x4b5   :  { %594 = shalt.err (%p722_p11)  }
 0x4b6   :  { %596 = vsyncmov [#allocation5 + $0x5] }
 0x4b9   :  { %s597_s2 = vpop.sfrf %596 }
 0x4ba   :  { %p723_p13 = scmp.ne.s32.totalorder %s597_s2, 0 }
 0x4bc   :  { %601 = shalt.err (%p723_p13)  }
 0x4bd   :  { %603 = vsyncmov [#allocation5 + $0x6] }
 0x4c0   :  { %s604_s4 = vpop.sfrf %603 }
 0x4c1   :  { %p724_p1 = scmp.ne.s32.totalorder %s604_s4, 0 }
 0x4c3   :  { %608 = shalt.err (%p724_p1)  }
 0x4c4   :  { %610 = vsyncmov [#allocation5 + $0x7] }
 0x4c7   :  { %s611_s5 = vpop.sfrf %610 }
 0x4c8   :  { %p725_p3 = scmp.ne.s32.totalorder %s611_s5, 0 }
 0x4ca   :  { %615 = shalt.err (%p725_p3)  }

</bundles_post_ra>
